<compile_context>
chip_gen: v7x
topology: tpu7x:2x2x1
jax: 0.10.0
libtpu: 0.0.40
codegen_flags: <defaults>
</compile_context>

<pallas_src>
import functools
from typing import NamedTuple, Optional

import jax
import jax.numpy as jnp
from jax.experimental import pallas as pl
from jax.experimental.pallas import tpu as pltpu


_M_ALIGN = 16   # sublane alignment (bf16 packs 2 rows/sublane; 16 is fine for f32)
_LANE = 128     # lane width


def _round_up(x, m):
    return ((x + m - 1) // m) * m


def _tpu_vmem_capacity_bytes():
    """Per-core VMEM capacity; falls back to the v7x value (64 MiB) if unknown."""
    try:
        return int(pltpu.get_tpu_info().vmem_capacity_bytes)
    except Exception:
        return 64 * 1024 * 1024


class AggPlan(NamedTuple):
    n_up: int
    n_down: int
    hid: int
    m_dim: int
    k_dim: int
    n_dim: int
    tm: int
    tk: int
    tn: int
    dnf_resident: bool
    compute_dtype: object
    vmem_limit_bytes: int


def make_plan(n_up, n_down, hid, *, tm=512, tn=256, tk=1024,
              use_bf16=True, dnf_resident: Optional[bool] = None) -> AggPlan:
    """Pick padded dims / tiles once per (graph, hid) configuration.

    use_bf16=True casts operands to bf16 (f32 MXU accumulation): exact for
    integer edge counts <= 256, ~3 decimal digits of feature precision; set
    use_bf16=False for a bit-exact f32 path.
    """
    compute_dtype = jnp.bfloat16 if use_bf16 else jnp.float32
    isz = jnp.dtype(compute_dtype).itemsize

    m_dim = _round_up(n_up, _M_ALIGN)
    k_dim = _round_up(n_down, _LANE)
    n_dim = _round_up(hid, _LANE)         # lane-dense output: >=128-wide stores

    # Requested tiles act as caps; keep them aligned and <= the padded problem.
    tm = max(_M_ALIGN, min(_round_up(tm, _M_ALIGN), m_dim))
    tk = max(_LANE, min(_round_up(tk, _LANE), k_dim))
    tn = max(_LANE, min(_round_up(tn, _LANE), n_dim))

    # Generation-aware VMEM budget: ~3/4 of physical VMEM, capped at 96 MiB
    # (=> ~48 MiB on v7x's 64 MiB, 96 MiB on v5e/v6e's 128 MiB).
    vmem_limit = min((3 * _tpu_vmem_capacity_bytes()) // 4, 96 * 1024 * 1024)

    def vmem_usage(tm_, tk_, tn_, resident):
        adj_b = 2 * tm_ * tk_ * isz                            # double-buffered
        dnf_b = 2 * (k_dim if resident else tk_) * tn_ * isz   # double-buffered
        out_b = 2 * tm_ * tn_ * 4                              # f32 output tile
        return adj_b + dnf_b + out_b

    # Shrink tiles until they fit (never triggers at demo sizes).
    while vmem_usage(tm, tk, tn, False) > vmem_limit and tk > _LANE:
        tk = max(_LANE, _round_up(tk // 2, _LANE))
    while vmem_usage(tm, tk, tn, False) > vmem_limit and tm > _M_ALIGN:
        tm = max(_M_ALIGN, _round_up(tm // 2, _M_ALIGN))

    # Pad the problem to tile multiples (zero padding is exact for a sum agg).
    m_dim = _round_up(m_dim, tm)
    k_dim = _round_up(k_dim, tk)
    n_dim = _round_up(n_dim, tn)

    # v7x has 2 TensorCores: guarantee >= 2 tiles on the parallel (M, N) grid
    # axes so both cores get work (neutral on single-core v5e/v6e).
    if (m_dim // tm) * (n_dim // tn) < 2 and m_dim >= 2 * _M_ALIGN:
        tm = _round_up(max(_M_ALIGN, (m_dim + 1) // 2), _M_ALIGN)
        m_dim = _round_up(m_dim, tm)

    # Keep the down-node features fully VMEM-resident when hid fits one N tile
    # and the whole (k_dim, tn) slab fits the budget: dnf is then DMA'd exactly
    # once for the whole kernel instead of once per M tile.
    if dnf_resident is None:
        dnf_resident = (n_dim == tn) and (vmem_usage(tm, tk, tn, True) <= vmem_limit)

    return AggPlan(n_up=n_up, n_down=n_down, hid=hid,
                   m_dim=m_dim, k_dim=k_dim, n_dim=n_dim,
                   tm=tm, tk=tk, tn=tn,
                   dnf_resident=bool(dnf_resident),
                   compute_dtype=compute_dtype,
                   vmem_limit_bytes=int(vmem_limit))


def prepare_adjacency(adj, plan: AggPlan):
    """Pad + cast the adjacency ONCE per graph; cache the result across steps.

    adj: [N_up, N_down] f32, entry = #edges (down_j -> up_i).
    """
    n_up, n_down = adj.shape
    assert (n_up, n_down) == (plan.n_up, plan.n_down)

    if plan.compute_dtype == jnp.bfloat16:
        # bf16 represents integer edge counts exactly only up to 256.
        max_count = None
        try:
            max_count = float(jnp.max(adj))
        except Exception:
            pass  # traced adjacency: skip the eager check
        if max_count is not None and max_count > 256.0:
            raise ValueError(
                "adjacency edge counts > 256 are not exact in bf16; "
                "build the plan with use_bf16=False")

    adj_p = jnp.pad(adj, ((0, plan.m_dim - n_up), (0, plan.k_dim - n_down)))
    return adj_p.astype(plan.compute_dtype)


# ----------------------------------------------------------------------------
# Kernels: one (tm, tn) output tile, accumulated over the K grid axis directly
# in out_ref (f32, VMEM-resident across K since its block index ignores k).
# ----------------------------------------------------------------------------

def _agg_kernel_tiled(adj_ref, dnf_ref, out_ref):
    @pl.when(pl.program_id(2) == 0)
    def _():
        out_ref[...] = jnp.zeros_like(out_ref)

    out_ref[...] += jnp.dot(adj_ref[...], dnf_ref[...],
                            preferred_element_type=jnp.float32)


def _agg_kernel_resident(adj_ref, dnf_ref, out_ref, *, tk):
    # dnf block spans the whole K dim (fetched once); slice the tk chunk here.
    k = pl.program_id(2)

    @pl.when(k == 0)
    def _():
        out_ref[...] = jnp.zeros_like(out_ref)

    start = pl.multiple_of(k * tk, _LANE)
    out_ref[...] += jnp.dot(adj_ref[...], dnf_ref[pl.ds(start, tk), :],
                            preferred_element_type=jnp.float32)


def down_to_up_agg(adj_prepared, down_nf, plan: AggPlan):
    """Forward pass of Down_to_Up_aggLayer: unf = A @ down_nf.

    adj_prepared: output of prepare_adjacency() (padded, compute dtype, cached)
    down_nf:      [N_down, hid] f32 down-node features
    returns:      [N_up, hid]  f32 aggregated up-node features (unf)
    """
    n_down, hid = down_nf.shape
    assert n_down == plan.n_down and hid == plan.hid
    assert adj_prepared.shape == (plan.m_dim, plan.k_dim)
    assert adj_prepared.dtype == jnp.dtype(plan.compute_dtype)

    dnf_p = jnp.pad(down_nf, ((0, plan.k_dim - n_down), (0, plan.n_dim - hid)))
    dnf_p = dnf_p.astype(plan.compute_dtype)

    isz = jnp.dtype(plan.compute_dtype).itemsize
    grid = (plan.m_dim // plan.tm, plan.n_dim // plan.tn, plan.k_dim // plan.tk)

    if plan.dnf_resident:
        kernel = functools.partial(_agg_kernel_resident, tk=plan.tk)
        dnf_spec = pl.BlockSpec((plan.k_dim, plan.tn), lambda i, j, k: (0, j))
        dnf_reads = 1                      # fetched once for the whole kernel
    else:
        kernel = _agg_kernel_tiled
        dnf_spec = pl.BlockSpec((plan.tk, plan.tn), lambda i, j, k: (k, j))
        dnf_reads = grid[0]                # re-fetched for every M tile

    out_padded = pl.pallas_call(
        kernel,
        out_shape=jax.ShapeDtypeStruct((plan.m_dim, plan.n_dim), jnp.float32),
        grid_spec=pltpu.PrefetchScalarGridSpec(
            num_scalar_prefetch=0,
            grid=grid,
            in_specs=[
                pl.BlockSpec((plan.tm, plan.tk), lambda i, j, k: (i, k)),
                dnf_spec,
            ],
            out_specs=pl.BlockSpec((plan.tm, plan.tn), lambda i, j, k: (i, j)),
        ),
        compiler_params=pltpu.CompilerParams(
            dimension_semantics=("parallel", "parallel", "arbitrary"),
            vmem_limit_bytes=plan.vmem_limit_bytes,
            allow_input_fusion=[0, 1],
        ),
        cost_estimate=pl.CostEstimate(
            flops=2 * plan.m_dim * plan.k_dim * plan.n_dim,
            transcendentals=0,
            bytes_accessed=(plan.m_dim * plan.k_dim * isz
                            + plan.k_dim * plan.n_dim * isz * dnf_reads
                            + plan.m_dim * plan.n_dim * 4),
        ),
    )(adj_prepared, dnf_p)

    return out_padded[:plan.n_up, :plan.hid]


def down_to_up_agg_simple(adj, down_nf, **plan_kwargs):
    """Convenience one-shot wrapper (plan + prepare + call)."""
    n_up, n_down = adj.shape
    hid = down_nf.shape[1]
    plan = make_plan(n_up, n_down, hid, **plan_kwargs)
    return down_to_up_agg(prepare_adjacency(adj, plan), down_nf, plan)


# ----------------------------------------------------------------------------
# Helpers mirroring the PyTorch module's setup.
# ----------------------------------------------------------------------------

def build_adjacency(key, n_up, n_down, n_edges):
    """Deterministic synthetic bipartite graph (down -> up edges)."""
    k_src, k_dst = jax.random.split(key)
    src = jax.random.randint(k_src, (n_edges,), 0, n_down)  # down node ids
    dst = jax.random.randint(k_dst, (n_edges,), 0, n_up)    # up node ids
    adj = jnp.zeros((n_up, n_down), jnp.float32)
    # scatter-add so multi-edges sum, exactly like dgl.function.sum
    return adj.at[dst, src].add(1.0)


def init_gru_params(key, hid_dim):
    """GRUCell(hid_dim, hid_dim) params, matching nn.GRUCell shapes.
    Present in __init__ but unused in forward (its use is commented out in the
    original module), so it does not enter the kernel."""
    k1, k2, k3, k4 = jax.random.split(key, 4)
    scale = 1.0 / jnp.sqrt(hid_dim)
    return {
        "weight_ih": jax.random.uniform(k1, (3 * hid_dim, hid_dim), minval=-scale, maxval=scale),
        "weight_hh": jax.random.uniform(k2, (3 * hid_dim, hid_dim), minval=-scale, maxval=scale),
        "bias_ih": jax.random.uniform(k3, (3 * hid_dim,), minval=-scale, maxval=scale),
        "bias_hh": jax.random.uniform(k4, (3 * hid_dim,), minval=-scale, maxval=scale),
    }


if __name__ == "__main__":
    N_DOWN = 300   # number of down-type nodes
    N_UP = 200     # number of up-type nodes
    HID = 32       # args.hid_dim
    N_EDGES = 900

    key = jax.random.PRNGKey(0)
    k_graph, k_feat, k_gru = jax.random.split(key, 3)

    adj = build_adjacency(k_graph, N_UP, N_DOWN, N_EDGES)
    down_nf = jax.random.normal(k_feat, (N_DOWN, HID), dtype=jnp.float32)

    # Deterministic GRUCell params (present in __init__, unused in forward).
    _gru_params = init_gru_params(k_gru, HID)

    # Pure-JAX reference: copy_u + sum aggregation == A @ down_nf
    unf_ref = adj @ down_nf

    # 1) Exact f32, tiled-dnf path, small tiles -> multi-step K accumulation
    #    into the resident out_ref is actually exercised (grid 4 x 1 x 3).
    unf_f32 = down_to_up_agg_simple(adj, down_nf, tm=64, tn=128, tk=128,
                                    use_bf16=False, dnf_resident=False)
    unf_f32 = jax.block_until_ready(unf_f32)
    assert unf_f32.shape == (N_UP, HID)
    assert jnp.allclose(unf_f32, unf_ref, atol=1e-4, rtol=1e-4)

    # 2) Exact f32, resident-dnf path with in-kernel pl.ds K slicing.
    unf_res = down_to_up_agg_simple(adj, down_nf, tm=64, tn=128, tk=128,
                                    use_bf16=False, dnf_resident=True)
    unf_res = jax.block_until_ready(unf_res)
    assert jnp.allclose(unf_res, unf_ref, atol=1e-4, rtol=1e-4)

    # 3) Production config: bf16 adjacency padded/cast ONCE and cached across
    #    steps, default (large) tiles, auto resident dnf, f32 accumulation.
    plan = make_plan(N_UP, N_DOWN, HID)           # use_bf16=True (documented)
    adj_prepared = prepare_adjacency(adj, plan)   # <- cache this per graph
    unf_bf16 = jax.block_until_ready(down_to_up_agg(adj_prepared, down_nf, plan))
    assert unf_bf16.shape == (N_UP, HID)
    assert jnp.allclose(unf_bf16, unf_ref, atol=5e-2, rtol=5e-2)

    print("KERNEL_OK")
</pallas_src>

<mosaic_0001>
module attributes {stable_mosaic.version = 11 : i64} {
  func.func @_agg_kernel_tiled(%arg0: i32, %arg1: i32, %arg2: i32, %arg3: memref<64x128xf32, #tpu.memory_space<vmem>>, %arg4: memref<128x128xf32, #tpu.memory_space<vmem>>, %arg5: memref<64x128xf32, #tpu.memory_space<vmem>>) attributes {dimension_semantics = [#tpu.dimension_semantics<parallel>, #tpu.dimension_semantics<parallel>, #tpu.dimension_semantics<arbitrary>], iteration_bounds = array<i64: 4, 1, 3>, scalar_prefetch = 0 : i64, scratch_operands = 0 : i64, tpu.core_type = #tpu.core_type<tc>, window_params = [{transform_indices = @transform_0, window_bounds = array<i64: 64, 128>}, {transform_indices = @transform_1, window_bounds = array<i64: 128, 128>}, {transform_indices = @transform_2, window_bounds = array<i64: 64, 128>}]} {
    %c0_i32 = arith.constant 0 : i32
    %0 = arith.cmpi eq, %arg2, %c0_i32 : i32
    %1 = arith.extui %0 : i1 to i32
    %c0_i32_0 = arith.constant 0 : i32
    %2 = arith.cmpi ne, %1, %c0_i32_0 : i32
    scf.if %2 {
      %cst_8 = arith.constant 0.000000e+00 : f32
      %9 = vector.broadcast %cst_8 : f32 to vector<64x128xf32>
      %c0_9 = arith.constant 0 : index
      %c0_10 = arith.constant 0 : index
      %10 = vector.load %arg5[%c0_9, %c0_10] : memref<64x128xf32, #tpu.memory_space<vmem>>, vector<64x128xf32>
      tpu.vector_store %arg5[%c0_9, %c0_10], %9 {strides = array<i32>} : memref<64x128xf32, #tpu.memory_space<vmem>>, vector<64x128xf32>,
    } else {
    }
    %c0 = arith.constant 0 : index
    %c0_1 = arith.constant 0 : index
    %3 = vector.load %arg5[%c0, %c0_1] : memref<64x128xf32, #tpu.memory_space<vmem>>, vector<64x128xf32>
    %c0_2 = arith.constant 0 : index
    %c0_3 = arith.constant 0 : index
    %4 = vector.load %arg3[%c0_2, %c0_3] : memref<64x128xf32, #tpu.memory_space<vmem>>, vector<64x128xf32>
    %c0_4 = arith.constant 0 : index
    %c0_5 = arith.constant 0 : index
    %5 = vector.load %arg4[%c0_4, %c0_5] : memref<128x128xf32, #tpu.memory_space<vmem>>, vector<128x128xf32>
    %cst = arith.constant dense<0.000000e+00> : vector<64x128xf32>
    %6 = tpu.matmul %4, %5, %cst {dimension_numbers = #tpu.dot_dimension_numbers<[1], [0], [0], [1], [0, 0, 1, 1], [], []>} : vector<64x128xf32>, vector<128x128xf32>, vector<64x128xf32> -> vector<64x128xf32>
    %7 = arith.addf %3, %6 : vector<64x128xf32>
    %c0_6 = arith.constant 0 : index
    %c0_7 = arith.constant 0 : index
    %8 = vector.load %arg5[%c0_6, %c0_7] : memref<64x128xf32, #tpu.memory_space<vmem>>, vector<64x128xf32>
    tpu.vector_store %arg5[%c0_6, %c0_7], %7 {strides = array<i32>} : memref<64x128xf32, #tpu.memory_space<vmem>>, vector<64x128xf32>,
    return
  }
  func.func @transform_0(%arg0: i32, %arg1: i32, %arg2: i32) -> (i32, i32) {
    %c0_i32 = arith.constant 0 : i32
    return %arg0, %arg2 : i32, i32
  }
  func.func @transform_1(%arg0: i32, %arg1: i32, %arg2: i32) -> (i32, i32) {
    %c0_i32 = arith.constant 0 : i32
    return %arg2, %arg1 : i32, i32
  }
  func.func @transform_2(%arg0: i32, %arg1: i32, %arg2: i32) -> (i32, i32) {
    %c0_i32 = arith.constant 0 : i32
    return %arg0, %arg1 : i32, i32
  }
}

</mosaic_0001>

<bundles_post_ra>
// kernel: tpu_custom_call.1
= control target key start
LH: loop header
LB: loop body
LE: loop exit
PB: predicated region body
PF: predicated region fallthrough
CT: control target
= control target key end

     0   :  { %s1443_s0 = inlined_call_operand.hbm [shape: f32[256,384], index: 0, kind: input, shape index: {}]   ;;  %s1444_s1 = inlined_call_operand.hbm [shape: f32[384,128], index: 1, kind: input, shape index: {}]   ;;  %s1445_s2 = inlined_call_operand.hbm [shape: f32[256,128], index: 2, kind: output, shape index: {}]  }
   0x1   :  { %1458 = sst [smem:[#allocation16_spill]] %s1443_s0 }
   0x2   :  { %1459 = sst [smem:[#allocation17_spill]] %s1445_s2 }
   0x3   :  { %7 = vsyncpa [#allocation3], 0 }
   0x4   :  { %9 = vsyncpa [#allocation3 + $0x1], 0 }
   0x5   :  { %10 = vsyncpa [#allocation6], 0 }
   0x6   :  { %12 = vsyncpa [#allocation6 + $0x1], 0 }
   0x7   :  { %13 = vsyncpa [#allocation4], 0 }
   0x8   :  { %15 = vsyncpa [#allocation4 + $0x1], 0  ;;  %s1042_s9 = smov 0   ;;  %s1044_s10 = smov 0  }
   0x9   :  { %s1046_s11 = smov 0   ;;  %s1048_s12 = smov 0  }
   0xa   :  { %s1050_s13 = smov 0   ;;  %s1052_s14 = smov 0  }
   0xb   :  { %s1054_s15 = smov 0   ;;  %s1056_s16 = smov 0  }
   0xc   :  { %s1058_s17 = smov 0   ;;  %s1060_s18 = smov 0  }
   0xd   :  { %s1062_s19 = smov 0   ;;  %s1064_s20 = smov 0  }
   0xe   :  { %s1066_s21 = smov 0   ;;  %s1068_s22 = smov 0  }
   0xf LB: > { %1460 = sst [smem:[#allocation11_spill]] %s1004_s19  ;;  %s33_s23 = sadd.s32 1, %s1008_s20  ;;  %s1016_s22 = sphi %s1068_s22, %s21_s22   ;;  %s1012_s21 = sphi %s1066_s21, %s1491_s21   ;;  %s1008_s20 = sphi %s1064_s20, %s1490_s20   ;;  %s1004_s19 = sphi %s1062_s19, %s1489_s19   ;;  %s1000_s18 = sphi %s1060_s18, %s1488_s18   ;;  %s996_s17 = sphi %s1058_s17, %s1500_s17   ;;  %s992_s16 = sphi %s1056_s16, %s1499_s16   ;;  %s988_s15 = sphi %s1054_s15, %s1498_s15   ;;  %s984_s14 = sphi %s1052_s14, %s1497_s14   ;;  %s980_s13 = sphi %s1050_s13, %s1496_s13   ;;  %s976_s12 = sphi %s1048_s12, %s1495_s12   ;;  %s972_s11 = sphi %s1046_s11, %s1494_s11   ;;  %s968_s10 = sphi %s1044_s10, %s1493_s10   ;;  %s964_s9 = sphi %s1042_s9, %s1492_s9  }
  0x10   : > { %1461 = sst [smem:[#allocation12_spill]] %s1008_s20  ;;  %s40_s24 = sadd.s32 1, %s1012_s21 }
  0x11   : > { %1462 = sst [smem:[#allocation13_spill]] %s1012_s21  ;;  %p34_p0 = scmp.ge.s32.totalorder %s33_s23, 3 }
  0x12   : > { %s49_s25 = sadd.s32 1, %s996_s17  ;;  %p56_p1 = scmp.ne.s32.totalorder %s996_s17, %s992_s16 }
  0x13   : > { %p1450_p2 = scmp.eq.s32.totalorder %s1016_s22, 0  ;;  %s1502_s23 = smov (%p34_p0, %s33_s23), 0 }
  0x14   : > { %1463 = sst [smem:[#allocation14_spill]] %s1502_s23  ;;  %s1504_s24 = smov (!%p34_p0, %s40_s24), %s1012_s21 }
  0x15   : > { %s1123_s26 = ssub.s32 %s1008_s20, %s1502_s23  ;;  %p1127_p3 = por %p1450_p2, %p56_p1 }
  0x16   : > { %p42_p4 = scmp.ge.s32.totalorder %s1504_s24, 4  ;;  %s105_s28 = sadd.s32 1, %s972_s11 }
  0x17   : > { %p1449_p7 = scmp.lt.s32.totalorder %s1016_s22, 12  ;;  %s142_s30 = sand.u32 1, %s996_s17  }
  0x18   : > { %s1506_s24 = smov (%p42_p4, %s1504_s24), 0  ;;  %s533_s6 = sshll.u32 %s142_s30, 6 }
  0x19   : > { %1465 = sst [smem:[#allocation15_spill]] %s1506_s24  ;;  %s44_s29 = ssub.s32 %s1012_s21, %s1506_s24 }
  0x1a   : > { %s46_s3 = sor.u32 %s1123_s26, %s44_s29  ;;  %p103_p8 = scmp.eq.s32.totalorder %s44_s29, 0 }
  0x1b   : > { %p47_p9 = scmp.eq.s32.totalorder %s46_s3, 0  ;;  %s668_s7 = smul.u32 24, %s1012_s21 }
  0x1c   : > { %s1143_s4 = scalar_select %p103_p8, %s972_s11, %s105_s28  }
  0x1d   : > { %s1146_s5 = scalar_select %p47_p9, %s996_s17, %s49_s25  }
  0x1e   : > { %p1153_p10 = pnand %p1449_p7, %p1127_p3  ;;  %s152_s24 = sadd.s32 %s1008_s20, %s668_s7 }
  0x1f   : > { %s146_s23 = scalar_lea.vmem [#allocation2], %s533_s6  ;;  %s536_s19 = sshll.u32 %s152_s24, 7 }
  0x20   : > { %s155_s2 = sshll.u32 %s146_s23, 4  ;;  %s1467_s0 = sld [smem:[#allocation16_spill]]  ;;  %s1158_s2 = int_to_ptr.vmem [resolvable:$true] %s155_s2 }
  0x21   : > { %p540_p11 = scmp.ge.s32.totalorder %s1016_s22, 1  ;;  %s1166_s27 = scalar_lea.sflag [#allocation3], %s142_s30 }
  0x22   : > { %p808_p13 = pneg %p1153_p10 }
  0x26   : > { %s1163_s25 = scalar_lea.hbm %s1467_s0, %s536_s19  ;;  %s811_s19 = scalar_lea.hbm %s1467_s0, 12288 }
  0x27   : > { %s806_s3 = scalar_lea.hbm %s1163_s25, 1024  ;;  %p812_p3 = scmp.lt.u32.totalorder %s1163_s25, %s1467_s0 }
  0x28   : > { %p807_p12 = scmp.ne.s32.totalorder %s1163_s25, %s806_s3  ;;  %p813_p4 = scmp.lt.u32.totalorder %s811_s19, %s806_s3 }
  0x29   : > { %p815_p9 = scmp.lt.u32.totalorder %s806_s3, %s1163_s25 }
  0x2a   : > { %p809_p0 = pnand %p808_p13, %p807_p12  ;;  %p814_p8 = por %p813_p4, %p812_p3 }
  0x2c   : > { %p810_p1 = pneg %p809_p0  ;;  %p816_p7 = por %p815_p9, %p814_p8 }
  0x2e   : > { %p817_p2 = pnand %p816_p7, %p810_p1 }
  0x30   : > { %820 = shalt.err (!%p817_p2)
}
  0x31   : > { %s821_s30 = scalar_lea.vmem %s1158_s2, 1024  ;;  %s1018_s28 = smov [#allocation2]  }
  0x32   : > { %p822_p12 = scmp.ne.s32.totalorder %s1158_s2, %s821_s30  ;;  %s826_s29 = sshll.u32 %s1018_s28, 4  ;;  %s827_s29 = int_to_ptr.vmem [resolvable:$false] %s826_s29 }
  0x33   : > { %s828_s23 = scalar_lea.vmem %s827_s29, 2048  ;;  %p829_p6 = scmp.lt.s32.totalorder %s1158_s2, %s827_s29 }
  0x34   : > { %p824_p0 = pnand %p822_p12, %p808_p13  ;;  %p830_p3 = scmp.lt.s32.totalorder %s828_s23, %s821_s30 }
  0x36   : > { %p825_p5 = pneg %p824_p0  ;;  %p831_p4 = por %p830_p3, %p829_p6 }
  0x38   : > { %p832_p8 = pnand %p831_p4, %p825_p5 }
  0x3a   : > { %835 = shalt.err (!%p832_p8)
}
  0x3b   : > { %s1019_s3 = smov 384   ;;  %s1451_s24 = smov 128  }
  0x3c   : > { %s1452_s19 = smov 8   ;;  %p185_p2 = scmp.lt.s32.totalorder %s1016_s22, 13 }
  0x3d   : > { %678 = dma.hbm_to_vmem [thread:$0]  (!%p1153_p10), %s1163_s25, 1024, %s1158_s2, %s1166_s27, %s1019_s3, %s1451_s24, %s1452_s19  }
  0x3e   : > { %p1199_p5 = pnand %p540_p11, %p185_p2  ;;  %s529_s7 = sadd.s32 4294967295, %s1016_s22  }
  0x3f   : > { %s530_s30 = sadd.s32 4294967294, %s1016_s22   ;;  %p63_p6 = scmp.eq.s32.totalorder %s529_s7, 0 }
  0x40   : > { %s77_s28 = sadd.s32 1, %s984_s14  ;;  %p1469_p7 = scmp.eq.s32.totalorder %s1123_s26, 0 }
  0x41   : > { %p1470_p13 = scmp.ne.s32.totalorder %s992_s16, %s988_s15  ;;  %p84_p10 = scmp.ne.s32.totalorder %s984_s14, %s980_s13 }
  0x42   : > { %s1209_s29 = scalar_select %p1469_p7, %s984_s14, %s77_s28  }
  0x43   : > { %p1214_p1 = por %p63_p6, %p1470_p13  ;;  %p90_p11 = scmp.ne.s32.totalorder %s980_s13, %s976_s12 }
  0x44   : > { %p115_p9 = scmp.ne.s32.totalorder %s972_s11, %s968_s10  ;;  %p1472_p12 = scmp.eq.s32.totalorder %s1016_s22, 0 }
  0x45   : > { %s1471_s8 = scalar_select %p1214_p1, 1, 0 }
  0x46   : > { %p86_p0 = por %p84_p10, %p1472_p12  ;;  %p116_p3 = scmp.eq.s32.totalorder %s529_s7, 11 }
  0x47   : > { %p1226_p4 = por %p90_p11, %p63_p6  ;;  %p121_p8 = scmp.ne.s32.totalorder %s968_s10, %s964_s9 }
  0x48   : > { %p1232_p2 = por %p116_p3, %p115_p9  ;;  %p122_p7 = scmp.eq.s32.totalorder %s530_s30, 11 }
  0x49   : > { %s1473_s2 = scalar_select %p1226_p4, 1, 0 }
  0x4a   : > { %s1474_s26 = scalar_select %p1232_p2, 1, 0 }
  0x4b   : > { %s165_s15 = sand.u32 1, %s984_s14   ;;  %s550_s25 = sshll.u32 %s1008_s20, 11 }
  0x4c   : > { %p1238_p13 = por %p122_p7, %p121_p8  ;;  %s537_s12 = sshll.u32 %s165_s15, 7 }
  0x4d   : > { %s1245_s7 = scalar_lea.hbm %s1444_s1, %s550_s25  ;;  %p1476_p6 = scmp.lt.s32.totalorder %s1016_s22, 12 }
  0x4e   : > { %s1475_s27 = scalar_select %p1238_p13, 1, 0 }
  0x4f   : > { %p1249_p10 = pnand %p1476_p6, %p86_p0  ;;  %s169_s30 = scalar_lea.vmem [#allocation5], %s537_s12 }
  0x50   : > { %s177_s24 = sshll.u32 %s169_s30, 4  ;;  %s1255_s19 = scalar_lea.sflag [#allocation6], %s165_s15  ;;  %s1253_s24 = int_to_ptr.vmem [resolvable:$true] %s177_s24 }
  0x51   : > { %s836_s23 = scalar_lea.hbm %s1245_s7, 2048  ;;  %p838_p9 = pneg %p1249_p10 }
  0x52   : > { %p837_p11 = scmp.ne.s32.totalorder %s1245_s7, %s836_s23  ;;  %s841_s0 = scalar_lea.hbm %s1444_s1, 6144 }
  0x53   : > { %p842_p0 = scmp.lt.u32.totalorder %s1245_s7, %s1444_s1  ;;  %p843_p8 = scmp.lt.u32.totalorder %s841_s0, %s836_s23 }
  0x54   : > { %p839_p12 = pnand %p838_p9, %p837_p11  ;;  %p845_p6 = scmp.lt.u32.totalorder %s836_s23, %s1245_s7 }
  0x55   : > { %p844_p7 = por %p843_p8, %p842_p0 }
  0x56   : > { %p840_p3 = pneg %p839_p12 }
  0x57   : > { %p846_p13 = por %p845_p6, %p844_p7 }
  0x59   : > { %p847_p2 = pnand %p846_p13, %p840_p3 }
  0x5b   : > { %850 = shalt.err (!%p847_p2)
}
  0x5c   : > { %s851_s15 = scalar_lea.vmem %s1253_s24, 2048  ;;  %s1022_s12 = smov [#allocation5]  }
  0x5d   : > { %p852_p11 = scmp.ne.s32.totalorder %s1253_s24, %s851_s15  ;;  %s856_s30 = sshll.u32 %s1022_s12, 4  ;;  %s857_s30 = int_to_ptr.vmem [resolvable:$false] %s856_s30 }
  0x5e   : > { %s858_s20 = scalar_lea.vmem %s857_s30, 4096  ;;  %p859_p1 = scmp.lt.s32.totalorder %s1253_s24, %s857_s30 }
  0x5f   : > { %p854_p12 = pnand %p852_p11, %p838_p9  ;;  %p860_p0 = scmp.lt.s32.totalorder %s858_s20, %s851_s15 }
  0x61   : > { %p855_p4 = pneg %p854_p12  ;;  %p861_p8 = por %p860_p0, %p859_p1 }
  0x63   : > { %p862_p7 = pnand %p861_p8, %p855_p4 }
  0x65   : > { %865 = shalt.err (!%p862_p7)
}
  0x66   : > { %s1478_s0 = smov 8   ;;  %s1479_s21 = smov 128  }
  0x67   : > { %681 = dma.hbm_to_vmem [thread:$0]  (!%p1249_p10), %s1245_s7, 2048, %s1253_s24, %s1255_s19, %s1479_s21, %s1479_s21, %s1478_s0  }
  0x68   : > { %189 = sbr.rel (%p1199_p5) target bundleno = 394 (0x18a), region = 28  ;;  %s191_s23 = sand.u32 (!%p1199_p5), 1, %s992_s16  }
  0x69   : > { %s541_s25 = sshll.u32 (!%p1199_p5), %s191_s23, 6  ;;  %s192_s3 = scalar_lea.sflag (!%p1199_p5), [#allocation3], %s191_s23 }
  0x6a   : > { %s1289_s15 = scalar_lea.vmem (!%p1199_p5), [#allocation2], %s541_s25  ;;  %p1480_p1 = scmp.ne.s32.totalorder (!%p1199_p5), %s1471_s8, 0 }
  0x6f   : > { %951 = dma.done.wait (%p1480_p1), %s192_s3, 1024  }
  0x70   : > { %953 = vsyncadd (%p1480_p1), %s192_s3, 4294966272  ;;  %s200_s28 = sand.u32 1, %s980_s13   ;;  %p1481_p5 = scmp.ne.s32.totalorder %s1473_s2, 0 }
  0x71   : > { %s542_s12 = sshll.u32 %s200_s28, 7  ;;  %s201_s24 = scalar_lea.sflag [#allocation6], %s200_s28 }
  0x72   : > { %s1296_s19 = scalar_lea.vmem [#allocation5], %s542_s12 }
  0x73   : > { %955 = dma.done.wait (%p1481_p5), %s201_s24, 2048  }
  0x74   : > { %957 = vsyncadd (%p1481_p5), %s201_s24, 4294965248  ;;  %s227_s6 = sand.u32 1, %s968_s10   ;;  %p544_p4 = scmp.ne.s32.totalorder %s1000_s18, 0 }
  0x75   : > { %s543_s7 = sshll.u32 %s227_s6, 6  ;;  %v1023_v0 = vmov (!%p544_p4), 0.0  }
  0x76   : > { %s1305_s30 = scalar_lea.vmem [#allocation7], %s543_s7  ;;  %236 = sbr.rel (%p544_p4) target bundleno = 125 (0x7d), region = 40 }
  0x77   : > { %237 = vst [vmem:[%s1305_s30] sm:$0xff] (!%p544_p4), %v1023_v0  ;;  %238 = vst [vmem:[%s1305_s30 + $0x8] sm:$0xff] (!%p544_p4), %v1023_v0 }
  0x78   : > { %239 = vst [vmem:[%s1305_s30 + $0x10] sm:$0xff] (!%p544_p4), %v1023_v0  ;;  %240 = vst [vmem:[%s1305_s30 + $0x18] sm:$0xff] (!%p544_p4), %v1023_v0 }
  0x79   : > { %241 = vst [vmem:[%s1305_s30 + $0x20] sm:$0xff] (!%p544_p4), %v1023_v0  ;;  %242 = vst [vmem:[%s1305_s30 + $0x28] sm:$0xff] (!%p544_p4), %v1023_v0 }
  0x7a   : > { %243 = vst [vmem:[%s1305_s30 + $0x30] sm:$0xff] (!%p544_p4), %v1023_v0  ;;  %244 = vst [vmem:[%s1305_s30 + $0x38] sm:$0xff] (!%p544_p4), %v1023_v0 }
  0x7d PF: > { %v261_v1 = vld [vmem:[%s1296_s19] sm:$0xff]  ;;  %v262_v2 = vld [vmem:[%s1296_s19 + $0x8] sm:$0xff]  ;;  %v263_v3 = vld [vmem:[%s1296_s19 + $0x10] sm:$0xff]  ;;  %s1482_s18 = sld [smem:[#allocation11_spill]]  ;;  %s413_s2 = sshll.u32 %s1305_s30, 4  ;;  %s1359_s2 = int_to_ptr.vmem [resolvable:$true] %s413_s2 }
  0x7e   : > { %v620_v4 = vpack.c.bf16 %v262_v2, %v261_v1  ;;  %v264_v5 = vld [vmem:[%s1296_s19 + $0x18] sm:$0xff]  ;;  %v265_v7 = vld [vmem:[%s1296_s19 + $0x20] sm:$0xff]  ;;  %v266_v8 = vld [vmem:[%s1296_s19 + $0x28] sm:$0xff]  ;;  %s1483_s21 = sld [smem:[#allocation17_spill]]  ;;  %s1367_s3 = scalar_lea.sflag [#allocation4], %s227_s6 }
  0x7f   : > { %v624_v6 = vpack.c.bf16 %v264_v5, %v263_v3  ;;  %v628_v9 = vpack.c.bf16 %v266_v8, %v265_v7  ;;  %v253_v10 = vld [vmem:[%s1289_s15] sm:$0xff]  ;;  %v267_v12 = vld [vmem:[%s1296_s19 + $0x30] sm:$0xff]  ;;  %v268_v13 = vld [vmem:[%s1296_s19 + $0x38] sm:$0xff]  ;;  %p1485_p13 = scmp.ne.s32.totalorder %s1474_s26, 0  ;;  %s1024_s28 = smov [#allocation7]  }
  0x80   : > { %621 = vmatprep.subr.bf16.mxu0 %v620_v4  ;;  %652 = vmatprep.subr.bf16.mxu1 %v620_v4  ;;  %v257_v11 = vld [vmem:[%s1289_s15 + $0x20] sm:$0xff]  ;;  %v632_v14 = vpack.c.bf16 %v268_v13, %v267_v12  ;;  %v270_v16 = vld [vmem:[%s1296_s19 + $0x48] sm:$0xff]  ;;  %v271_v18 = vld [vmem:[%s1296_s19 + $0x50] sm:$0xff]  ;;  %s870_s12 = sshll.u32 %s1024_s28, 4  ;;  %s871_s12 = int_to_ptr.vmem [resolvable:$false] %s870_s12 }
  0x81   : > { %623 = vmatpush3.bf16.msra.mxu0 %v620_v4  ;;  %660 = vmatpush3.bf16.msra.mxu1 %v620_v4  ;;  %v269_v15 = vld [vmem:[%s1296_s19 + $0x40] sm:$0xff]  ;;  %v272_v19 = vld [vmem:[%s1296_s19 + $0x58] sm:$0xff]  ;;  %v274_v22 = vld [vmem:[%s1296_s19 + $0x68] sm:$0xff]  ;;  %s872_s24 = scalar_lea.vmem %s871_s12, 2048  ;;  %p873_p3 = scmp.lt.s32.totalorder %s1359_s2, %s871_s12 }
  0x82   : > { %625 = vmatprep.subr.bf16.mxu0 %v624_v6  ;;  %653 = vmatprep.subr.bf16.mxu1 %v624_v6  ;;  %v636_v17 = vpack.c.bf16 %v270_v16, %v269_v15  ;;  %v640_v20 = vpack.c.bf16 %v272_v19, %v271_v18  ;;  %v273_v21 = vld [vmem:[%s1296_s19 + $0x60] sm:$0xff]  ;;  %v275_v24 = vld [vmem:[%s1296_s19 + $0x70] sm:$0xff]  ;;  %v276_v25 = vld [vmem:[%s1296_s19 + $0x78] sm:$0xff] }
  0x83   : > { %608 = vmatprep.mubr.f32.mxu0 %v253_v10  ;;  %614 = vmatprep.mubr.f32.mxu1 %v257_v11  ;;  %v644_v23 = vpack.c.bf16 %v274_v22, %v273_v21  ;;  %v648_v26 = vpack.c.bf16 %v276_v25, %v275_v24  ;;  %v254_v27 = vld [vmem:[%s1289_s15 + $0x8] sm:$0xff]  ;;  %v255_v29 = vld [vmem:[%s1289_s15 + $0x10] sm:$0xff]  ;;  %v256_v31 = vld [vmem:[%s1289_s15 + $0x18] sm:$0xff]  ;;  %s551_s8 = sshll.u32 %s1482_s18, 10 }
  0x84   : > { %v258_v28 = vld [vmem:[%s1289_s15 + $0x28] sm:$0xff]  ;;  %v259_v30 = vld [vmem:[%s1289_s15 + $0x30] sm:$0xff]  ;;  %v260_v32 = vld [vmem:[%s1289_s15 + $0x38] sm:$0xff]  ;;  %s1484_s23 = smov %s1483_s21  ;;  %s1357_s25 = scalar_lea.hbm %s1483_s21, %s551_s8 }
  0x85   : > { %627 = vmatpush3.bf16.msra.mxu0 %v624_v6  ;;  %661 = vmatpush3.bf16.msra.mxu1 %v624_v6  ;;  %v246_v33 = vld [vmem:[%s1305_s30 + $0x8] sm:$0xff]  ;;  %v245_v35 = vld [vmem:[%s1305_s30] sm:$0xff]  ;;  %v248_v45 = vld [vmem:[%s1305_s30 + $0x18] sm:$0xff]  ;;  %s866_s15 = scalar_lea.vmem %s1359_s2, 1024 }
  0x86   : > { %629 = vmatprep.subr.bf16.mxu0 %v628_v9  ;;  %654 = vmatprep.subr.bf16.mxu1 %v628_v9  ;;  %v250_v34 = vld [vmem:[%s1305_s30 + $0x28] sm:$0xff]  ;;  %v249_v36 = vld [vmem:[%s1305_s30 + $0x20] sm:$0xff]  ;;  %v252_v46 = vld [vmem:[%s1305_s30 + $0x38] sm:$0xff]  ;;  %p867_p2 = scmp.ne.s32.totalorder %s1359_s2, %s866_s15  ;;  %p874_p6 = scmp.lt.s32.totalorder %s872_s24, %s866_s15 }
  0x87   : > { %v247_v47 = vld [vmem:[%s1305_s30 + $0x10] sm:$0xff] }
  0x88   : > { %v251_v48 = vld [vmem:[%s1305_s30 + $0x30] sm:$0xff]  ;;  %p868_p10 = pnand %p867_p2, %p1485_p13  ;;  %p875_p11 = por %p874_p6, %p873_p3 }
  0x89   : > { %631 = vmatpush3.bf16.msra.mxu0 %v628_v9  ;;  %662 = vmatpush3.bf16.msra.mxu1 %v628_v9 }
  0x8a   : > { %633 = vmatprep.subr.bf16.mxu0 %v632_v14  ;;  %655 = vmatprep.subr.bf16.mxu1 %v632_v14  ;;  %p869_p9 = pneg %p868_p10 }
  0x8c   : > { %p876_p12 = pnand %p875_p11, %p869_p9 }
  0x8d   : > { %635 = vmatpush3.bf16.msra.mxu0 %v632_v14  ;;  %663 = vmatpush3.bf16.msra.mxu1 %v632_v14 }
  0x8e   : > { %637 = vmatprep.subr.bf16.mxu0 %v636_v17  ;;  %656 = vmatprep.subr.bf16.mxu1 %v636_v17 }
  0x91   : > { %639 = vmatpush3.bf16.msra.mxu0 %v636_v17  ;;  %664 = vmatpush3.bf16.msra.mxu1 %v636_v17 }
  0x92   : > { %641 = vmatprep.subr.bf16.mxu0 %v640_v20  ;;  %657 = vmatprep.subr.bf16.mxu1 %v640_v20 }
  0x95   : > { %643 = vmatpush3.bf16.msra.mxu0 %v640_v20  ;;  %665 = vmatpush3.bf16.msra.mxu1 %v640_v20 }
  0x96   : > { %645 = vmatprep.subr.bf16.mxu0 %v644_v23  ;;  %658 = vmatprep.subr.bf16.mxu1 %v644_v23 }
  0x99   : > { %647 = vmatpush3.bf16.msra.mxu0 %v644_v23  ;;  %666 = vmatpush3.bf16.msra.mxu1 %v644_v23 }
  0x9a   : > { %649 = vmatprep.subr.bf16.mxu0 %v648_v26  ;;  %659 = vmatprep.subr.bf16.mxu1 %v648_v26 }
  0x9d   : > { %651 = vmatpush3.bf16.msra.mxu0 %v648_v26  ;;  %667 = vmatpush3.bf16.msra.mxu1 %v648_v26 }
  0xa0   : > { %609 = vmatmul.mubr.f32.vlgmr.msra.gmra.mrb[0].mxu0 %v254_v27  ;;  %615 = vmatmul.mubr.f32.vlgmr.msra.gmra.mrb[0].mxu1 %v258_v28 }
  0xa1   : > { %611 = vmatprep.mubr.f32.mxu0 %v255_v29  ;;  %617 = vmatprep.mubr.f32.mxu1 %v259_v30 }
  0xa4   : > { %612 = vmatmul.mubr.f32.gmra.mrb[2].mxu0 %v256_v31  ;;  %618 = vmatmul.mubr.f32.gmra.mrb[2].mxu1 %v260_v32 }
 0x173   : > { %v610_v37 = vpop.f32.mrb[0].mxu0  ;;  %v616_v38 = vpop.f32.mrb[0].mxu1 }
 0x174   : > { %v383_v39 = vadd.f32 %v610_v37, %v246_v33  ;;  %v387_v40 = vadd.f32 %v616_v38, %v250_v34  ;;  %v343_v41 = vpop.f32.mrb[1].mxu0  ;;  %v363_v42 = vpop.f32.mrb[1].mxu1 }
 0x175   : > { %v382_v43 = vadd.f32 %v343_v41, %v245_v35  ;;  %v386_v44 = vadd.f32 %v363_v42, %v249_v36 }
 0x176   : > { %391 = vst [vmem:[%s1305_s30 + $0x8] sm:$0xff] %v383_v39  ;;  %395 = vst [vmem:[%s1305_s30 + $0x28] sm:$0xff] %v387_v40 }
 0x177   : > { %390 = vst [vmem:[%s1305_s30] sm:$0xff] %v382_v43  ;;  %394 = vst [vmem:[%s1305_s30 + $0x20] sm:$0xff] %v386_v44  ;;  %v613_v49 = vpop.f32.mrb[2].mxu0  ;;  %v619_v50 = vpop.f32.mrb[2].mxu1 }
 0x178   : > { %v385_v51 = vadd.f32 %v613_v49, %v248_v45  ;;  %v389_v52 = vadd.f32 %v619_v50, %v252_v46  ;;  %v353_v53 = vpop.f32.mrb[3].mxu0  ;;  %v373_v54 = vpop.f32.mrb[3].mxu1 }
 0x179   : > { %v384_v55 = vadd.f32 %v353_v53, %v247_v47  ;;  %v388_v56 = vadd.f32 %v373_v54, %v251_v48 }
 0x17a   : > { %393 = vst [vmem:[%s1305_s30 + $0x18] sm:$0xff] %v385_v51  ;;  %397 = vst [vmem:[%s1305_s30 + $0x38] sm:$0xff] %v389_v52 }
 0x17b   : > { %392 = vst [vmem:[%s1305_s30 + $0x10] sm:$0xff] %v384_v55  ;;  %396 = vst [vmem:[%s1305_s30 + $0x30] sm:$0xff] %v388_v56 }
 0x17c   : > { %879 = shalt.err (!%p876_p12)
}
 0x17d   : > { %s880_s19 = scalar_lea.hbm %s1357_s25, 1024  ;;  %s884_s30 = scalar_lea.hbm %s1484_s23, 4096 }
 0x17e   : > { %p881_p0 = scmp.ne.s32.totalorder %s1357_s25, %s880_s19  ;;  %p885_p1 = scmp.lt.u32.totalorder %s1357_s25, %s1484_s23 }
 0x17f   : > { %p886_p5 = scmp.lt.u32.totalorder %s884_s30, %s880_s19  ;;  %p888_p2 = scmp.lt.u32.totalorder %s880_s19, %s1357_s25 }
 0x180   : > { %p882_p8 = pnand %p881_p0, %p1485_p13 }
 0x181   : > { %p887_p4 = por %p886_p5, %p885_p1 }
 0x182   : > { %p883_p7 = pneg %p882_p8 }
 0x183   : > { %p889_p10 = por %p888_p2, %p887_p4 }
 0x185   : > { %p890_p9 = pnand %p889_p10, %p883_p7 }
 0x187   : > { %893 = shalt.err (!%p890_p9)
}
 0x188   : > { %s1025_s20 = smov 128   ;;  %s1026_s0 = smov 8  }
 0x189   : > { %673 = dma.vmem_to_hbm [thread:$0]  (%p1485_p13), %s1359_s2, 1024, %s1357_s25, %s1367_s3, %s1025_s20, %s1025_s20, %s1026_s0  }
 0x18a PF: > { %p687_p3 = scmp.ge.s32.totalorder %s1016_s22, 2  ;;  %s428_s21 = sand.u32 1, %s964_s9  }
 0x18b   : > { %p1486_p6 = scmp.ne.s32.totalorder %s1475_s27, 0  ;;  %s429_s15 = scalar_lea.sflag [#allocation4], %s428_s21 }
 0x18d   : > { %p683_p11 = pnand %p687_p3, %p1486_p6 }
 0x18f   : > { %959 = dma.done.wait (!%p683_p11), %s429_s15, 1024  }
 0x190   : > { %961 = vsyncadd (!%p683_p11), %s429_s15, 4294966272  ;;  %s21_s22 = sadd.s32 1, %s1016_s22   ;;  %s1488_s18 = sld [smem:[#allocation12_spill]] }
 0x191   : > { %p1396_p12 = scmp.ge.s32.totalorder %s21_s22, 14   ;;  %s1489_s19 = sld [smem:[#allocation13_spill]] }
 0x192   : > { %s1490_s20 = sld [smem:[#allocation14_spill]]  ;;  %s1491_s21 = sld [smem:[#allocation15_spill]] }
 0x193   : > { %s1492_s9 = smov %s968_s10  ;;  %s1493_s10 = smov %s972_s11 }
 0x194   : > { %s1494_s11 = smov %s1143_s4  ;;  %s1495_s12 = smov %s980_s13 }
 0x195   : > { %s1496_s13 = smov %s984_s14  ;;  %s1497_s14 = smov %s1209_s29 }
 0x196   : > { %s1498_s15 = smov %s992_s16  ;;  %s1499_s16 = smov %s996_s17 }
 0x197   : > { %s1500_s17 = smov %s1146_s5  ;;  %20 = sbr.rel (!%p1396_p12) target bundleno = 15 (0xf), region = 90 }
 0x19e   :  { %434 = vsyncpa [#allocation3], 1 }
 0x19f   :  { %436 = vsyncpa [#allocation3 + $0x1], 1 }
 0x1a0   :  { %437 = vsyncpa [#allocation6], 1 }
 0x1a1   :  { %439 = vsyncpa [#allocation6 + $0x1], 1 }
 0x1a2   :  { %440 = vsyncpa [#allocation4], 1 }
 0x1a3   :  { %442 = vsyncpa [#allocation4 + $0x1], 1 }

</bundles_post_ra>
